<compile_context>
chip_gen: v5e
topology: v5e:2x2
jax: 0.10.0
libtpu: 0.0.40
codegen_flags: <defaults>
</compile_context>

<pallas_src>
import functools

import jax
import jax.numpy as jnp
from jax.experimental import pallas as pl
from jax.experimental.pallas import tpu as pltpu


def pinn_kernel(xt_ref, w1t_ref, b1t_ref, w2t_ref, b2t_ref, w3t_ref, b3t_ref,
                o_ref):
    """Fused 3-layer MLP on one lane-dense batch tile (batch on lanes)."""
    xt = xt_ref[...]  # [Fp, tb], compute dtype (bf16 or f32)

    # Layer 1: [H, Fp] @ [Fp, tb] -> [H, tb]; f32 accumulation on the MXU.
    z1 = jnp.dot(w1t_ref[...], xt, preferred_element_type=jnp.float32)
    h1 = jnp.tanh(z1 + b1t_ref[...])          # f32 bias add + tanh (EUP)
    h1 = h1.astype(xt.dtype)                  # narrow only for the next MXU pass

    # Layer 2: [H, H] @ [H, tb] -> [H, tb]
    z2 = jnp.dot(w2t_ref[...], h1, preferred_element_type=jnp.float32)
    h2 = jnp.tanh(z2 + b2t_ref[...]).astype(xt.dtype)

    # Layer 3: [1, H] @ [H, tb] -> [1, tb]  (lane-dense output row)
    z3 = jnp.dot(w3t_ref[...], h2, preferred_element_type=jnp.float32)
    o_ref[...] = (z3 + b3t_ref[...]).astype(o_ref.dtype)


@functools.partial(jax.jit, static_argnames=("tb", "compute_dtype"))
def pinn_forward(x, params, *, tb=512, compute_dtype=jnp.bfloat16):
    """x: [B, F] float32, params = (w1, b1, w2, b2, w3, b3) with w stored
    [in_features, out_features] and b stored [1, out_features]."""
    w1, b1, w2, b2, w3, b3 = params
    B, F = x.shape
    H = w1.shape[1]
    F_pad = max(8, pl.cdiv(F, 8) * 8)          # sublane-aligned feature dim

    # --- choose a lane-aligned batch tile -----------------------------------
    B_pad = pl.cdiv(B, 128) * 128
    # Aim for >=2 grid steps (megacore / v7x dual TC) without dropping below
    # 128 lanes or exceeding the requested (overhead-amortizing) tile.
    tb_cap = max(128, (B_pad // 2) // 128 * 128)
    tb = max(128, min(tb, tb_cap) // 128 * 128)
    B_pad = pl.cdiv(B_pad, tb) * tb
    grid = (B_pad // tb,)

    # --- transpose / pad to the lane-dense layout (one-time, tiny tensors) --
    xT = jnp.pad(x.T.astype(compute_dtype),
                 ((0, F_pad - F), (0, B_pad - B)))            # [Fp, B_pad]
    w1t = jnp.pad(w1.T.astype(compute_dtype), ((0, 0), (0, F_pad - F)))  # [H, Fp]
    w2t = w2.T.astype(compute_dtype)                          # [H, H]
    w3t = w3.T.astype(compute_dtype)                          # [1, H]
    b1t = b1.T.astype(jnp.float32)                            # [H, 1]
    b2t = b2.T.astype(jnp.float32)                            # [H, 1]
    b3t = b3.T.astype(jnp.float32)                            # [1, 1]

    yT = pl.pallas_call(
        pinn_kernel,
        out_shape=jax.ShapeDtypeStruct((1, B_pad), jnp.float32),
        grid_spec=pltpu.PrefetchScalarGridSpec(
            num_scalar_prefetch=0,
            grid=grid,
            in_specs=[
                pl.BlockSpec((F_pad, tb), lambda i: (0, i)),   # xT tile (lane-dense)
                pl.BlockSpec((H, F_pad), lambda i: (0, 0)),    # W1ᵀ (resident)
                pl.BlockSpec((H, 1), lambda i: (0, 0)),        # b1
                pl.BlockSpec((H, H), lambda i: (0, 0)),        # W2ᵀ (resident)
                pl.BlockSpec((H, 1), lambda i: (0, 0)),        # b2
                pl.BlockSpec((1, H), lambda i: (0, 0)),        # W3ᵀ (resident)
                pl.BlockSpec((1, 1), lambda i: (0, 0)),        # b3
            ],
            out_specs=pl.BlockSpec((1, tb), lambda i: (0, i)),  # lane-dense out
        ),
        compiler_params=pltpu.CompilerParams(
            dimension_semantics=("parallel",),  # shard batch tiles across TCs
        ),
    )(xT, w1t, b1t, w2t, b2t, w3t, b3t)

    # Back to the PyTorch [B, 1] shape; drop batch padding.
    return yT[0, :B].reshape(B, 1)


def init_params(key, input_size=5, hidden=64):
    """Deterministic init mimicking PyTorch Linear default
    (U[-1/sqrt(fan_in), +1/sqrt(fan_in)]); weights stored [in, out]."""
    def linear(k, fan_in, fan_out):
        kw, kb = jax.random.split(k)
        bound = 1.0 / jnp.sqrt(fan_in)
        w = jax.random.uniform(kw, (fan_in, fan_out), jnp.float32, -bound, bound)
        b = jax.random.uniform(kb, (1, fan_out), jnp.float32, -bound, bound)
        return w, b

    k1, k2, k3 = jax.random.split(key, 3)
    w1, b1 = linear(k1, input_size, hidden)
    w2, b2 = linear(k2, hidden, hidden)
    w3, b3 = linear(k3, hidden, 1)
    return (w1, b1, w2, b2, w3, b3)


def pinn_forward_ref(x, params):
    w1, b1, w2, b2, w3, b3 = params
    h1 = jnp.tanh(x @ w1 + b1)
    h2 = jnp.tanh(h1 @ w2 + b2)
    return h2 @ w3 + b3


# TODO(synk): physics_loss (Archard wear-law MSE) is a training-time auxiliary
# loss, not part of forward(); intentionally not implemented as a kernel.

if __name__ == "__main__":
    key = jax.random.PRNGKey(0)
    k_params, k_x = jax.random.split(key)

    INPUT_SIZE = 5
    HIDDEN = 64
    BATCH = 256  # -> two lane-dense tiles of 128 (exercises the parallel grid)

    params = init_params(k_params, input_size=INPUT_SIZE, hidden=HIDDEN)
    # Inputs: columns are [pressure, velocity, hardness, ...]; keep positive-ish.
    x = jax.random.uniform(k_x, (BATCH, INPUT_SIZE), jnp.float32, 0.1, 1.0)

    y_ref = pinn_forward_ref(x, params)

    # f32 path: correctness anchor (same math as the PyTorch forward).
    y_f32 = jax.block_until_ready(
        pinn_forward(x, params, compute_dtype=jnp.float32))
    assert y_f32.shape == (BATCH, 1)
    assert jnp.allclose(y_f32, y_ref, atol=1e-4, rtol=1e-4)

    # bf16 path: production config (bf16 MXU operands, f32 accumulation).
    y_bf16 = jax.block_until_ready(
        pinn_forward(x, params, compute_dtype=jnp.bfloat16))
    assert y_bf16.shape == (BATCH, 1)
    assert jnp.allclose(y_bf16, y_ref, atol=5e-2, rtol=5e-2)

    print("KERNEL_OK")
</pallas_src>

<mosaic_0001>
module attributes {stable_mosaic.version = 11 : i64} {
  func.func @pinn_kernel(%arg0: i32, %arg1: memref<8x128xf32, #tpu.memory_space<vmem>>, %arg2: memref<64x8xf32, #tpu.memory_space<vmem>>, %arg3: memref<64x1xf32, #tpu.memory_space<vmem>>, %arg4: memref<64x64xf32, #tpu.memory_space<vmem>>, %arg5: memref<64x1xf32, #tpu.memory_space<vmem>>, %arg6: memref<1x64xf32, #tpu.memory_space<vmem>>, %arg7: memref<1x1xf32, #tpu.memory_space<vmem>>, %arg8: memref<1x128xf32, #tpu.memory_space<vmem>>) attributes {dimension_semantics = [#tpu.dimension_semantics<parallel>], iteration_bounds = array<i64: 2>, scalar_prefetch = 0 : i64, scratch_operands = 0 : i64, tpu.core_type = #tpu.core_type<tc>, window_params = [{transform_indices = @transform_0, window_bounds = array<i64: 8, 128>}, {pipeline_mode = #tpu.pipeline_mode<synchronous>, transform_indices = @transform_1, window_bounds = array<i64: 64, 8>}, {pipeline_mode = #tpu.pipeline_mode<synchronous>, transform_indices = @transform_2, window_bounds = array<i64: 64, 1>}, {pipeline_mode = #tpu.pipeline_mode<synchronous>, transform_indices = @transform_3, window_bounds = array<i64: 64, 64>}, {pipeline_mode = #tpu.pipeline_mode<synchronous>, transform_indices = @transform_4, window_bounds = array<i64: 64, 1>}, {pipeline_mode = #tpu.pipeline_mode<synchronous>, transform_indices = @transform_5, window_bounds = array<i64: 1, 64>}, {pipeline_mode = #tpu.pipeline_mode<synchronous>, transform_indices = @transform_6, window_bounds = array<i64: 1, 1>}, {transform_indices = @transform_7, window_bounds = array<i64: 1, 128>}]} {
    %c0 = arith.constant 0 : index
    %c0_0 = arith.constant 0 : index
    %0 = vector.load %arg1[%c0, %c0_0] : memref<8x128xf32, #tpu.memory_space<vmem>>, vector<8x128xf32>
    %c0_1 = arith.constant 0 : index
    %c0_2 = arith.constant 0 : index
    %1 = vector.load %arg2[%c0_1, %c0_2] : memref<64x8xf32, #tpu.memory_space<vmem>>, vector<64x8xf32>
    %cst = arith.constant dense<0.000000e+00> : vector<64x128xf32>
    %2 = tpu.matmul %1, %0, %cst {dimension_numbers = #tpu.dot_dimension_numbers<[1], [0], [0], [1], [0, 0, 1, 1], [], []>} : vector<64x8xf32>, vector<8x128xf32>, vector<64x128xf32> -> vector<64x128xf32>
    %c0_3 = arith.constant 0 : index
    %c0_4 = arith.constant 0 : index
    %3 = vector.load %arg3[%c0_3, %c0_4] : memref<64x1xf32, #tpu.memory_space<vmem>>, vector<64x1xf32>
    %4 = vector.broadcast %3 : vector<64x1xf32> to vector<64x128xf32>
    %5 = arith.addf %2, %4 : vector<64x128xf32>
    %6 = math.tanh %5 : vector<64x128xf32>
    %c0_5 = arith.constant 0 : index
    %c0_6 = arith.constant 0 : index
    %7 = vector.load %arg4[%c0_5, %c0_6] : memref<64x64xf32, #tpu.memory_space<vmem>>, vector<64x64xf32>
    %cst_7 = arith.constant dense<0.000000e+00> : vector<64x128xf32>
    %8 = tpu.matmul %7, %6, %cst_7 {dimension_numbers = #tpu.dot_dimension_numbers<[1], [0], [0], [1], [0, 0, 1, 1], [], []>} : vector<64x64xf32>, vector<64x128xf32>, vector<64x128xf32> -> vector<64x128xf32>
    %c0_8 = arith.constant 0 : index
    %c0_9 = arith.constant 0 : index
    %9 = vector.load %arg5[%c0_8, %c0_9] : memref<64x1xf32, #tpu.memory_space<vmem>>, vector<64x1xf32>
    %10 = vector.broadcast %9 : vector<64x1xf32> to vector<64x128xf32>
    %11 = arith.addf %8, %10 : vector<64x128xf32>
    %12 = math.tanh %11 : vector<64x128xf32>
    %c0_10 = arith.constant 0 : index
    %c0_11 = arith.constant 0 : index
    %13 = vector.load %arg6[%c0_10, %c0_11] : memref<1x64xf32, #tpu.memory_space<vmem>>, vector<1x64xf32>
    %cst_12 = arith.constant dense<0.000000e+00> : vector<1x128xf32>
    %14 = tpu.matmul %13, %12, %cst_12 {dimension_numbers = #tpu.dot_dimension_numbers<[1], [0], [0], [1], [0, 0, 1, 1], [], []>} : vector<1x64xf32>, vector<64x128xf32>, vector<1x128xf32> -> vector<1x128xf32>
    %c0_13 = arith.constant 0 : index
    %c0_14 = arith.constant 0 : index
    %15 = vector.load %arg7[%c0_13, %c0_14] : memref<1x1xf32, #tpu.memory_space<vmem>>, vector<1x1xf32>
    %16 = vector.broadcast %15 : vector<1x1xf32> to vector<1x128xf32>
    %17 = arith.addf %14, %16 : vector<1x128xf32>
    %c0_15 = arith.constant 0 : index
    %c0_16 = arith.constant 0 : index
    %18 = vector.load %arg8[%c0_15, %c0_16] : memref<1x128xf32, #tpu.memory_space<vmem>>, vector<1x128xf32>
    tpu.vector_store %arg8[%c0_15, %c0_16], %17 {strides = array<i32>} : memref<1x128xf32, #tpu.memory_space<vmem>>, vector<1x128xf32>,
    return
  }
  func.func @transform_0(%arg0: i32) -> (i32, i32) {
    %c0_i32 = arith.constant 0 : i32
    %c0_i32_0 = arith.constant 0 : i32
    return %c0_i32, %arg0 : i32, i32
  }
  func.func @transform_1(%arg0: i32) -> (i32, i32) {
    %c0_i32 = arith.constant 0 : i32
    %c0_i32_0 = arith.constant 0 : i32
    %c0_i32_1 = arith.constant 0 : i32
    return %c0_i32, %c0_i32_0 : i32, i32
  }
  func.func @transform_2(%arg0: i32) -> (i32, i32) {
    %c0_i32 = arith.constant 0 : i32
    %c0_i32_0 = arith.constant 0 : i32
    %c0_i32_1 = arith.constant 0 : i32
    return %c0_i32, %c0_i32_0 : i32, i32
  }
  func.func @transform_3(%arg0: i32) -> (i32, i32) {
    %c0_i32 = arith.constant 0 : i32
    %c0_i32_0 = arith.constant 0 : i32
    %c0_i32_1 = arith.constant 0 : i32
    return %c0_i32, %c0_i32_0 : i32, i32
  }
  func.func @transform_4(%arg0: i32) -> (i32, i32) {
    %c0_i32 = arith.constant 0 : i32
    %c0_i32_0 = arith.constant 0 : i32
    %c0_i32_1 = arith.constant 0 : i32
    return %c0_i32, %c0_i32_0 : i32, i32
  }
  func.func @transform_5(%arg0: i32) -> (i32, i32) {
    %c0_i32 = arith.constant 0 : i32
    %c0_i32_0 = arith.constant 0 : i32
    %c0_i32_1 = arith.constant 0 : i32
    return %c0_i32, %c0_i32_0 : i32, i32
  }
  func.func @transform_6(%arg0: i32) -> (i32, i32) {
    %c0_i32 = arith.constant 0 : i32
    %c0_i32_0 = arith.constant 0 : i32
    %c0_i32_1 = arith.constant 0 : i32
    return %c0_i32, %c0_i32_0 : i32, i32
  }
  func.func @transform_7(%arg0: i32) -> (i32, i32) {
    %c0_i32 = arith.constant 0 : i32
    %c0_i32_0 = arith.constant 0 : i32
    return %c0_i32, %arg0 : i32, i32
  }
}

</mosaic_0001>

<bundles_post_ra>
// kernel: pinn_forward.1
= control target key start
LH: loop header
LB: loop body
LE: loop exit
PB: predicated region body
PF: predicated region fallthrough
CT: control target
= control target key end

     0   :  { %s1053_s0 = inlined_call_operand.vmem [shape: f32[8,256], index: 0, kind: input, shape index: {}]   ;;  %s1054_s1 = inlined_call_operand.vmem [shape: f32[64,8], index: 1, kind: input, shape index: {}]   ;;  %s1055_s2 = inlined_call_operand.vmem [shape: f32[64,1], index: 2, kind: input, shape index: {}]   ;;  %s1056_s3 = inlined_call_operand.vmem [shape: f32[64,64], index: 3, kind: input, shape index: {}]   ;;  %s1057_s4 = inlined_call_operand.vmem [shape: f32[64,1], index: 4, kind: input, shape index: {}]   ;;  %s1058_s5 = inlined_call_operand.vmem [shape: f32[1,64], index: 5, kind: input, shape index: {}]   ;;  %s1059_s6 = inlined_call_operand.<no memory space> [shape: f32[1,1], index: 6, kind: input, shape index: {}]   ;;  %s1060_s7 = inlined_call_operand.hbm [shape: f32[1,256], index: 7, kind: output, shape index: {}]  }
   0x1   :  { %v12_v0 = vstv %s1059_s6 }
   0x2   :  { %13 = vst [vmem:[#allocation2] sm:$0x1] %v12_v0 }
   0x3   :  { %14 = vsyncpa [#allocation4], 0 }
   0x4   :  { %16 = vsyncpa [#allocation4 + $0x1], 0  ;;  %s852_s26 = smov 0   ;;  %s854_s27 = smov 0  }
   0x5   :  { %s856_s28 = smov 0   ;;  %s858_s29 = smov 0  }
   0x6 LB: > { %s873_s6 = sadd.s32 4294967295, %s806_s29   ;;  %s636_s30 = sadd.s32 4294967294, %s806_s29   ;;  %s806_s29 = sphi %s858_s29, %s1066_s29   ;;  %s802_s28 = sphi %s856_s28, %s1065_s28   ;;  %s798_s27 = sphi %s854_s27, %s1064_s27   ;;  %s794_s26 = sphi %s852_s26, %s1063_s26  }
   0x7   : > { %s877_s8 = sadd.s32 1, %s806_s29   ;;  %s181_s9 = sadd.s32 1, %s802_s28 }
   0x8   : > { %s178_s10 = ssub.s32 %s806_s29, %s877_s8  ;;  %p191_p0 = scmp.ne.s32.totalorder %s802_s28, %s798_s27 }
   0x9   : > { %p179_p1 = scmp.eq.s32.totalorder %s178_s10, 0  ;;  %p192_p2 = scmp.eq.s32.totalorder %s873_s6, 1 }
   0xa   : > { %p197_p3 = scmp.ne.s32.totalorder %s798_s27, %s794_s26  ;;  %p198_p4 = scmp.eq.s32.totalorder %s636_s30, 1 }
   0xb   : > { %s888_s11 = scalar_select %p179_p1, %s802_s28, %s181_s9  }
   0xc   : > { %p890_p5 = por %p192_p2, %p191_p0  ;;  %p894_p6 = por %p198_p4, %p197_p3 }
   0xd   : > { %p639_p7 = scmp.ge.s32.totalorder %s806_s29, 1  ;;  %p241_p8 = scmp.lt.s32.totalorder %s806_s29, 3 }
   0xf   : > { %p242_p9 = pnand %p639_p7, %p241_p8 }
  0x10   : > { %p271_p10 = scmp.lt.s32.totalorder (!%p242_p9), %s873_s6, 1  ;;  %s269_s25 = sand.u32 (!%p242_p9), 1, %s798_s27  }
  0x11   : > { %245 = sbr.rel (%p242_p9) target bundleno = 531 (0x213), region = 48  ;;  %s577_s10 = scalar_lea.hbm (!%p242_p9), %s1060_s7, %s873_s6 }
  0x12   : > { %s270_s14 = scalar_lea.vmem (!%p242_p9), [#allocation3], %s269_s25  ;;  %s581_s16 = sshll.u32 (!%p242_p9), %s577_s10, 4  ;;  %s582_s16 = int_to_ptr.hbm [resolvable:$true] %s581_s16 }
  0x13   : > { %s579_s15 = sshll.u32 (!%p242_p9), %s270_s14, 4  ;;  %s569_s17 = scalar_lea.sflag (!%p242_p9), [#allocation4], %s269_s25  ;;  %s580_s15 = int_to_ptr.vmem [resolvable:$true] %s579_s15 }
  0x14   : > { %s764_s21 = scalar_lea.hbm (!%p242_p9), %s1060_s7, 2 }
  0x16   : > { %v289_v1 = vld [vmem:[%s1055_s2 + $0x28] sm:$0xff]  ;;  %v291_v2 = vld [vmem:[%s1055_s2 + $0x38] sm:$0xff]  ;;  %v808_v3 = vmov 0   ;;  %s272_s18 = scalar_select %p271_p10, %s873_s6, 1  ;;  %v276_v4 = vld [vmem:[%s1054_s1] sm:$0xff]  ;;  %vm332_vm0 = vcmask 64512  }
  0x17   : > { %710 = vset.pattern.permute.xlu1 %v808_v3  ;;  %709 = vset.pattern.permute.xlu0 %v808_v3  ;;  %v282_v5 = vld [vmem:[%s1054_s1 + $0x30] sm:$0xff]  ;;  %v288_v7 = vld [vmem:[%s1055_s2 + $0x20] sm:$0xff]  ;;  %v277_v9 = vld [vmem:[%s1054_s1 + $0x8] sm:$0xff]  ;;  %vm462_vm1 = vcmask 523264  }
  0x18   : > { %319 = vperm.xlu1 %710, %v289_v1   ;;  %329 = vperm.xlu0 %709, %v291_v2   ;;  %s640_s19 = sshll.u32 %s272_s18, 3  ;;  %v290_v8 = vld [vmem:[%s1055_s2 + $0x30] sm:$0xff]  ;;  %v283_v10 = vld [vmem:[%s1054_s1 + $0x38] sm:$0xff]  ;;  %v284_v11 = vld [vmem:[%s1055_s2] sm:$0xff]  ;;  %s758_s18 = sshra.s32 %s582_s16, 4  ;;  %s759_s18 = int_to_ptr.hbm [resolvable:$true] %s758_s18 }
  0x19   : > { %711 = vset.pattern.permute.xlu2 %v808_v3  ;;  %s274_s22 = scalar_lea.vmem %s1053_s0, %s640_s19  ;;  %v285_v12 = vld [vmem:[%s1055_s2 + $0x8] sm:$0xff]  ;;  %v287_v13 = vld [vmem:[%s1055_s2 + $0x18] sm:$0xff]  ;;  %v278_v14 = vld [vmem:[%s1054_s1 + $0x10] sm:$0xff]  ;;  %s760_s19 = scalar_lea.hbm %s759_s18, 1 }
  0x1a   : > { %v275_v6 = vld [vmem:[%s274_s22] sm:$0xff]  ;;  %309 = vperm.xlu2 %711, %v287_v13   ;;  %v286_v15 = vld [vmem:[%s1055_s2 + $0x10] sm:$0xff]  ;;  %v419_v17 = vld [vmem:[%s1057_s4 + $0x28] sm:$0xff]  ;;  %p761_p11 = scmp.ne.s32.totalorder %s759_s18, %s760_s19  ;;  %p765_p0 = scmp.lt.s32.totalorder %s759_s18, %s1060_s7 }
  0x1b   : > { %372 = vmatpush.msra.mxu0 %v275_v6  ;;  %660 = vmatpush.msra.mxu2 %v275_v6  ;;  %v420_v16 = vld [vmem:[%s1057_s4 + $0x30] sm:$0xff]  ;;  %v279_v18 = vld [vmem:[%s1054_s1 + $0x18] sm:$0xff]  ;;  %v280_v22 = vld [vmem:[%s1054_s1 + $0x20] sm:$0xff]  ;;  %p766_p1 = scmp.lt.s32.totalorder %s764_s21, %s760_s19 }
  0x1c   : > { %641 = vmatmul.msk.f32.vlgmr.msra.gmra.mxu0 %vm332_vm0, %v276_v4  ;;  %647 = vmatmul.msk.f32.vlgmr.msra.gmra.mxu2 %vm332_vm0, %v282_v5  ;;  %v421_v19 = vld [vmem:[%s1057_s4 + $0x38] sm:$0xff]  ;;  %v416_v21 = vld [vmem:[%s1057_s4 + $0x10] sm:$0xff]  ;;  %v418_v23 = vld [vmem:[%s1057_s4 + $0x20] sm:$0xff]  ;;  %p762_p12 = pnand %p761_p11, %p890_p5 }
  0x1d   : > { %v417_v20 = vld [vmem:[%s1057_s4 + $0x18] sm:$0xff]  ;;  %v414_v24 = vld [vmem:[%s1057_s4] sm:$0xff]  ;;  %v281_v26 = vld [vmem:[%s1054_s1 + $0x28] sm:$0xff]  ;;  %p767_p2 = por %p766_p1, %p765_p0 }
  0x1e   : > { %v537_v25 = vld [vmem:[#allocation2] sm:$0x1]  ;;  %v415_v27 = vld [vmem:[%s1057_s4 + $0x8] sm:$0xff]  ;;  %v408_v0 = vld [vmem:[%s1056_s3 + $0x10] sm:$0xff]  ;;  %p763_p13 = pneg %p762_p12 }
  0x1f   : > { %v406_v59 = vld [vmem:[%s1056_s3] sm:$0xff]  ;;  %v407_v62 = vld [vmem:[%s1056_s3 + $0x8] sm:$0xff]  ;;  %v412_v1 = vld [vmem:[%s1056_s3 + $0x30] sm:$0xff] }
  0x20   : > { %314 = vperm.xlu1 %710, %v288_v7   ;;  %324 = vperm.xlu0 %709, %v290_v8   ;;  %v410_v60 = vld [vmem:[%s1056_s3 + $0x20] sm:$0xff]  ;;  %v411_v63 = vld [vmem:[%s1056_s3 + $0x28] sm:$0xff]  ;;  %v409_v2 = vld [vmem:[%s1056_s3 + $0x18] sm:$0xff]  ;;  %p768_p3 = pnand %p767_p2, %p763_p13 }
  0x21   : > { %v413_v3 = vld [vmem:[%s1056_s3 + $0x38] sm:$0xff] }
  0x22   : > { %304 = vperm.xlu2 %711, %v286_v15  }
  0x24   : > { %642 = vmatmul.msk.f32.gmra.mxu0 %vm332_vm0, %v277_v9  ;;  %648 = vmatmul.msk.f32.gmra.mxu2 %vm332_vm0, %v283_v10 }
  0x28   : > { %294 = vperm.xlu1 %710, %v284_v11   ;;  %299 = vperm.xlu0 %709, %v285_v12  }
  0x2a   : > { %459 = vperm.xlu2 %711, %v421_v19  }
  0x2c   : > { %643 = vmatmul.msk.f32.gmra.mxu0 %vm332_vm0, %v278_v14 }
  0x30   : > { %454 = vperm.xlu0 %709, %v420_v16   ;;  %449 = vperm.xlu1 %710, %v419_v17  }
  0x32   : > { %444 = vperm.xlu2 %711, %v418_v23  }
  0x34   : > { %644 = vmatmul.msk.f32.gmra.mxu0 %vm332_vm0, %v279_v18 }
  0x38   : > { %439 = vperm.xlu0 %709, %v417_v20   ;;  %434 = vperm.xlu1 %710, %v416_v21  }
  0x3a   : > { %429 = vperm.xlu2 %711, %v415_v27  }
  0x3c   : > { %645 = vmatmul.msk.f32.gmra.mxu0 %vm332_vm0, %v280_v22 }
  0x40   : > { %424 = vperm.xlu0 %709, %v414_v24   ;;  %540 = vperm.xlu1 %710, %v537_v25  }
  0x44   : > { %646 = vmatmul.msk.f32.gmra.mxu0 %vm332_vm0, %v281_v26 }
  0x74   : > { %v310_v42 = vpop.permute.xlu2 %309 }
  0x7c   : > { %v305_v48 = vpop.permute.xlu2 %304 }
  0x84   : > { %v460_v8 = vpop.permute.xlu2 %459 }
  0x8a   : > { %v330_v29 = vpop.permute.xlu0 %329  ;;  %v320_v40 = vpop.permute.xlu1 %319 }
  0x8c   : > { %v445_v13 = vpop.permute.xlu2 %444 }
  0x92   : > { %v325_v32 = vpop.permute.xlu0 %324  ;;  %v315_v43 = vpop.permute.xlu1 %314 }
  0x94   : > { %v430_v25 = vpop.permute.xlu2 %429 }
  0x99   : > { %v374_v28 = vpop.f32.mrf.mxu0 }
  0x9a   : > { %v295_v50 = vpop.permute.xlu1 %294  ;;  %v300_v51 = vpop.permute.xlu0 %299 }
  0x9b   : > { %v375_v54 = vadd.f32 %v374_v28, %v295_v50 }
  0x9f   : > { %v392_v30 = vpop.f32.mrf.mxu2 }
  0xa0   : > { %v393_v33 = vadd.f32 %v392_v30, %v325_v32 }
  0xa1   : > { %v377_v31 = vpop.f32.mrf.mxu0 }
  0xa2   : > { %712 = vtanh.f32 %v393_v33  ;;  %v378_v52 = vadd.f32 %v377_v31, %v300_v51  ;;  %v455_v9 = vpop.permute.xlu0 %454  ;;  %v450_v12 = vpop.permute.xlu1 %449 }
  0xa7   : > { %v395_v34 = vpop.f32.mrf.mxu2 }
  0xa8   : > { %v396_v35 = vadd.f32 %v395_v34, %v330_v29  ;;  %v713_v37 = vpop.eup %712 }
  0xa9   : > { %v380_v36 = vpop.f32.mrf.mxu0 }
  0xaa   : > { %714 = vtanh.f32 %v396_v35  ;;  %v381_v49 = vadd.f32 %v380_v36, %v305_v48  ;;  %v440_v17 = vpop.permute.xlu0 %439  ;;  %v435_v22 = vpop.permute.xlu1 %434  ;;  %v536_v35 = vld [vmem:[%s1058_s5] sm:$0x1] }
  0xb0   : > { %v715_v38 = vpop.eup %714 }
  0xb1   : > { %v383_v39 = vpop.f32.mrf.mxu0  ;;  %495 = vmatpush.msra.mxu1 %v715_v38  ;;  %661 = vmatpush.msra.mxu3 %v715_v38 }
  0xb2   : > { %v384_v47 = vadd.f32 %v383_v39, %v310_v42  ;;  %v425_v28 = vpop.permute.xlu0 %424 }
  0xb3   : > { %496 = vmatpush.msra.mxu1 %v713_v37  ;;  %662 = vmatpush.msra.mxu3 %v713_v37  ;;  %v541_v37 = vpop.permute.xlu1 %540 }
  0xb4   : > { %v543_v38 = vperm.slane %v541_v37, 0 }
  0xb9   : > { %v386_v41 = vpop.f32.mrf.mxu0 }
  0xba   : > { %v387_v45 = vadd.f32 %v386_v41, %v315_v43 }
  0xc1   : > { %v389_v44 = vpop.f32.mrf.mxu0 }
  0xc2   : > { %v390_v46 = vadd.f32 %v389_v44, %v320_v40 }
  0xc4   : > { %716 = vtanh.f32 %v390_v46 }
  0xc5   : > { %718 = vtanh.f32 %v387_v45 }
  0xc6   : > { %720 = vtanh.f32 %v384_v47 }
  0xc7   : > { %722 = vtanh.f32 %v381_v49 }
  0xc8   : > { %724 = vtanh.f32 %v378_v52 }
  0xc9   : > { %726 = vtanh.f32 %v375_v54 }
  0xca   : > { %v717_v53 = vpop.eup %716 }
  0xcb   : > { %497 = vmatpush.msra.mxu1 %v717_v53  ;;  %663 = vmatpush.msra.mxu3 %v717_v53  ;;  %v719_v55 = vpop.eup %718 }
  0xcc   : > { %v721_v56 = vpop.eup %720 }
  0xcd   : > { %498 = vmatpush.msra.mxu1 %v719_v55  ;;  %664 = vmatpush.msra.mxu3 %v719_v55  ;;  %v723_v57 = vpop.eup %722 }
  0xce   : > { %v725_v58 = vpop.eup %724 }
  0xcf   : > { %499 = vmatpush.msra.mxu1 %v721_v56  ;;  %665 = vmatpush.msra.mxu3 %v721_v56  ;;  %v727_v61 = vpop.eup %726 }
  0xd1   : > { %500 = vmatpush.msra.mxu1 %v723_v57  ;;  %666 = vmatpush.msra.mxu3 %v723_v57 }
  0xd3   : > { %501 = vmatpush.msra.mxu1 %v725_v58  ;;  %667 = vmatpush.msra.mxu3 %v725_v58 }
  0xd5   : > { %502 = vmatpush.msra.mxu1 %v727_v61  ;;  %668 = vmatpush.msra.mxu3 %v727_v61 }
  0xd6   : > { %649 = vmatmul.msk.f32.vlgmr.msra.gmra.mxu1 %vm462_vm1, %v406_v59  ;;  %653 = vmatmul.msk.f32.vlgmr.msra.gmra.mxu3 %vm462_vm1, %v410_v60 }
  0xde   : > { %650 = vmatmul.msk.f32.gmra.mxu1 %vm462_vm1, %v407_v62  ;;  %654 = vmatmul.msk.f32.gmra.mxu3 %vm462_vm1, %v411_v63 }
  0xe6   : > { %651 = vmatmul.msk.f32.gmra.mxu1 %vm462_vm1, %v408_v0  ;;  %655 = vmatmul.msk.f32.gmra.mxu3 %vm462_vm1, %v412_v1 }
  0xee   : > { %652 = vmatmul.msk.f32.gmra.mxu1 %vm462_vm1, %v409_v2  ;;  %656 = vmatmul.msk.f32.gmra.mxu3 %vm462_vm1, %v413_v3 }
 0x153   : > { %v504_v4 = vpop.f32.mrf.mxu1 }
 0x154   : > { %v505_v30 = vadd.f32 %v504_v4, %v425_v28 }
 0x159   : > { %v516_v5 = vpop.f32.mrf.mxu3 }
 0x15a   : > { %v517_v20 = vadd.f32 %v516_v5, %v445_v13 }
 0x15b   : > { %v507_v6 = vpop.f32.mrf.mxu1 }
 0x15c   : > { %v508_v27 = vadd.f32 %v507_v6, %v430_v25 }
 0x161   : > { %v519_v7 = vpop.f32.mrf.mxu3 }
 0x162   : > { %v520_v18 = vadd.f32 %v519_v7, %v450_v12 }
 0x163   : > { %v510_v11 = vpop.f32.mrf.mxu1 }
 0x164   : > { %v511_v24 = vadd.f32 %v510_v11, %v435_v22 }
 0x169   : > { %v522_v10 = vpop.f32.mrf.mxu3 }
 0x16a   : > { %v523_v15 = vadd.f32 %v522_v10, %v455_v9 }
 0x16b   : > { %v513_v19 = vpop.f32.mrf.mxu1 }
 0x16c   : > { %v514_v21 = vadd.f32 %v513_v19, %v440_v17 }
 0x171   : > { %v525_v14 = vpop.f32.mrf.mxu3 }
 0x172   : > { %v526_v16 = vadd.f32 %v525_v14, %v460_v8 }
 0x174   : > { %728 = vtanh.f32 %v526_v16 }
 0x175   : > { %730 = vtanh.f32 %v523_v15 }
 0x176   : > { %732 = vtanh.f32 %v520_v18 }
 0x177   : > { %734 = vtanh.f32 %v517_v20 }
 0x178   : > { %736 = vtanh.f32 %v514_v21 }
 0x179   : > { %738 = vtanh.f32 %v511_v24 }
 0x17a   : > { %v729_v23 = vpop.eup %728  ;;  %740 = vtanh.f32 %v508_v27 }
 0x17b   : > { %555 = vmatpush.msrb.mxu2 %v729_v23  ;;  %v731_v26 = vpop.eup %730  ;;  %742 = vtanh.f32 %v505_v30 }
 0x17c   : > { %v733_v29 = vpop.eup %732 }
 0x17d   : > { %556 = vmatpush.msrb.mxu2 %v731_v26  ;;  %v735_v31 = vpop.eup %734 }
 0x17e   : > { %v737_v32 = vpop.eup %736 }
 0x17f   : > { %557 = vmatpush.msrb.mxu2 %v733_v29  ;;  %v739_v33 = vpop.eup %738 }
 0x180   : > { %v741_v34 = vpop.eup %740 }
 0x181   : > { %558 = vmatpush.msrb.mxu2 %v735_v31  ;;  %v743_v36 = vpop.eup %742 }
 0x183   : > { %559 = vmatpush.msrb.mxu2 %v737_v32 }
 0x185   : > { %560 = vmatpush.msrb.mxu2 %v739_v33 }
 0x187   : > { %561 = vmatpush.msrb.mxu2 %v741_v34 }
 0x189   : > { %562 = vmatpush.msrb.mxu2 %v743_v36 }
 0x18a   : > { %657 = vmatmul.msk.f32.vlgmr.msrb.gmra.mxu2 %vm462_vm1, %v536_v35 }
 0x20d   : > { %v564_v39 = vpop.f32.mrf.mxu2 }
 0x20e   : > { %v565_v40 = vadd.f32 %v564_v39, %v543_v38 }
 0x210   : > { %567 = vst [vmem:[%s270_s14] sm:$0x1] %v565_v40 }
 0x211   : > { %771 = shalt.err (!%p768_p3)
}
 0x212   : > { %669 = dma.vmem_to_hbm [thread:$0]  (%p890_p5), %s580_s15, 16, %s582_s16, %s569_s17  }
 0x213 PF: > { %p675_p4 = scmp.ge.s32.totalorder %s806_s29, 2  ;;  %s593_s24 = sand.u32 1, %s794_s26  }
 0x214   : > { %s594_s25 = scalar_lea.sflag [#allocation4], %s593_s24 }
 0x215   : > { %p672_p7 = pnand %p675_p4, %p894_p6 }
 0x217   : > { %p673_p8 = pneg %p672_p7 }
 0x219   : > { %789 = dma.done.wait (%p673_p8), %s594_s25, 16  }
 0x21a   : > { %791 = vsyncadd (%p673_p8), %s594_s25, 4294967280  ;;  %p19_p9 = scmp.ge.s32.totalorder %s877_s8, 4   ;;  %s1063_s26 = smov %s798_s27 }
 0x21b   : > { %s1064_s27 = smov %s802_s28  ;;  %s1065_s28 = smov %s888_s11 }
 0x21c   : > { %s1066_s29 = smov %s877_s8  ;;  %21 = sbr.rel (!%p19_p9) target bundleno = 6 (0x6), region = 83 }
 0x221   :  { %599 = vsyncpa [#allocation4], 1 }
 0x222   :  { %601 = vsyncpa [#allocation4 + $0x1], 1 }

</bundles_post_ra>
